<compile_context>
chip_gen: v6e
topology: v6e:2x2x1
jax: 0.10.0
libtpu: 0.0.40
codegen_flags: <defaults>
</compile_context>

<pallas_src>
import functools

import jax
import jax.numpy as jnp
from jax.experimental import pallas as pl
from jax.experimental.pallas import tpu as pltpu

LANES = 128


def _discrim_kernel(p_ref, x_ref, o_ref, *, din, hid, dout, nc):
    """Unrolled VPU forward of the tiny MLP.

    p_ref : SMEM flat params, layout w1[din,hid] | b1[hid] | w2[hid,dout] | b2[dout]
    x_ref : VMEM [din, nc, CH, 128]   (batch on sublane+lane axes)
    o_ref : VMEM [dout, nc, CH, 128]
    """
    off_w1 = 0
    off_b1 = din * hid
    off_w2 = off_b1 + hid
    off_b2 = off_w2 + hid * dout

    # Hoist all scalar SMEM reads out of the chunk loop (13 floats here).
    w1 = [[p_ref[off_w1 + i * hid + j] for j in range(hid)] for i in range(din)]
    b1 = [p_ref[off_b1 + j] for j in range(hid)]
    w2 = [[p_ref[off_w2 + j * dout + k] for k in range(dout)] for j in range(hid)]
    b2 = [p_ref[off_b2 + k] for k in range(dout)]

    @pl.loop(0, nc)
    def _(c):
        # Dense [CH, 128] slabs per input feature; chain stays in vregs.
        xs = [x_ref[i, c] for i in range(din)]
        accs = [None] * dout
        for j in range(hid):
            h = xs[0] * w1[0][j]
            for i in range(1, din):
                h = h + xs[i] * w1[i][j]
            h = jnp.maximum(h + b1[j], 0.0)          # ReLU(fc1)
            for k in range(dout):
                t = h * w2[j][k]
                accs[k] = t if accs[k] is None else accs[k] + t
        for k in range(dout):
            o_ref[k, c] = (accs[k] + b2[k]).astype(o_ref.dtype)


@functools.partial(jax.jit, static_argnames=("samples_per_step", "chunk_sublanes"))
def discrim_forward(x, w1, b1, w2, b2, *, samples_per_step=262144, chunk_sublanes=64):
    """x: [B, Din] f32; w1: [Din, H]; b1: [H]; w2: [H, Dout]; b2: [Dout]."""
    B, Din = x.shape
    H = w1.shape[1]
    Dout = w2.shape[1]

    assert chunk_sublanes % 8 == 0 and chunk_sublanes >= 8, "chunk must be 8-sublane aligned"
    chunk = chunk_sublanes * LANES                       # samples per in-kernel chunk

    # Flatten all weights/biases into one small SMEM vector.
    params = jnp.concatenate(
        [w1.reshape(-1), b1.reshape(-1), w2.reshape(-1), b2.reshape(-1)]
    ).astype(jnp.float32)

    # Tiling: `chunk` samples per [CH,128] slab; `nc` chunks per grid step,
    # chosen so each step moves ~samples_per_step samples (MiB-scale DMA) while
    # padding at most one extra chunk (steps split evenly, not pad-to-cap).
    n_chunks_min = pl.cdiv(B, chunk)
    nc_cap = max(1, samples_per_step // chunk)
    n_steps = pl.cdiv(n_chunks_min, nc_cap)
    nc = pl.cdiv(n_chunks_min, n_steps)                  # chunks per grid step (<= nc_cap)
    n_chunks = n_steps * nc
    B_pad = n_chunks * chunk

    # Sublane/lane-dense layout: samples on (sublane, lane), features leading.
    # (jit fuses transpose + pad into one producing copy.)
    xt = x.T.astype(jnp.float32)                          # [Din, B]
    if B_pad != B:
        xt = jnp.pad(xt, ((0, 0), (0, B_pad - B)))        # [Din, B_pad]
    xt = xt.reshape(Din, n_chunks, chunk_sublanes, LANES)  # free reshape

    kernel = functools.partial(_discrim_kernel, din=Din, hid=H, dout=Dout, nc=nc)

    out = pl.pallas_call(
        kernel,
        out_shape=jax.ShapeDtypeStruct(
            (Dout, n_chunks, chunk_sublanes, LANES), jnp.float32),
        grid=(n_steps,),
        in_specs=[
            pl.BlockSpec(memory_space=pltpu.MemorySpace.SMEM),      # params (scalars)
            pl.BlockSpec((Din, nc, chunk_sublanes, LANES),
                         lambda i: (0, i, 0, 0)),                   # x slabs
        ],
        out_specs=pl.BlockSpec((Dout, nc, chunk_sublanes, LANES),
                               lambda i: (0, i, 0, 0)),             # y slabs
        compiler_params=pltpu.CompilerParams(
            dimension_semantics=("parallel",)),
    )(params, xt)

    # Padded lanes compute relu(b1)·w2+b2; they are sliced off here.
    return out.reshape(Dout, B_pad)[:, :B].T.astype(x.dtype)        # [B, Dout]


def init_params(key, input_size=2, hidden_size=4, output_size=1):
    # Deterministic synthetic init (uniform, like PyTorch Linear default bounds).
    k1, k2, k3, k4 = jax.random.split(key, 4)
    bound1 = 1.0 / (input_size ** 0.5)
    bound2 = 1.0 / (hidden_size ** 0.5)
    # Stored as [in, out] (transposed vs torch's [out, in]) for direct x @ W.
    w1 = jax.random.uniform(k1, (input_size, hidden_size), jnp.float32,
                            -bound1, bound1)
    b1 = jax.random.uniform(k2, (hidden_size,), jnp.float32, -bound1, bound1)
    w2 = jax.random.uniform(k3, (hidden_size, output_size), jnp.float32,
                            -bound2, bound2)
    b2 = jax.random.uniform(k4, (output_size,), jnp.float32, -bound2, bound2)
    return w1, b1, w2, b2


def reference_forward(x, w1, b1, w2, b2):
    h = jnp.maximum(x @ w1 + b1, 0.0)
    return h @ w2 + b2


if __name__ == "__main__":
    key = jax.random.PRNGKey(0)
    kx, kx2, kp = jax.random.split(key, 3)

    # Small shapes consistent with the module (Linear(2,4) -> Linear(4,1)).
    B, Din, H, Dout = 8, 2, 4, 1
    x = jax.random.normal(kx, (B, Din), jnp.float32)
    w1, b1, w2, b2 = init_params(kp, Din, H, Dout)

    out = discrim_forward(x, w1, b1, w2, b2)
    jax.block_until_ready(out)
    ref = reference_forward(x, w1, b1, w2, b2)
    assert out.shape == (B, Dout)
    assert jnp.allclose(out, ref, atol=1e-5, rtol=1e-5)

    # Exercise multi-chunk inner loop and multi-step grid on a modest batch.
    B2 = 20000
    x2 = jax.random.normal(kx2, (B2, Din), jnp.float32)
    out2 = discrim_forward(x2, w1, b1, w2, b2, samples_per_step=16384)
    jax.block_until_ready(out2)
    ref2 = reference_forward(x2, w1, b1, w2, b2)
    assert out2.shape == (B2, Dout)
    assert jnp.allclose(out2, ref2, atol=1e-5, rtol=1e-5)

    print("KERNEL_OK")
</pallas_src>

<mosaic_0001>
module attributes {stable_mosaic.version = 11 : i64} {
  func.func @_discrim_kernel(%arg0: i32, %arg1: memref<17xf32, #tpu.memory_space<smem>>, %arg2: memref<2x1x64x128xf32, #tpu.memory_space<vmem>>, %arg3: memref<1x1x64x128xf32, #tpu.memory_space<vmem>>) attributes {dimension_semantics = [#tpu.dimension_semantics<parallel>], iteration_bounds = array<i64: 1>, scalar_prefetch = 0 : i64, scratch_operands = 0 : i64, tpu.core_type = #tpu.core_type<tc>, window_params = [{transform_indices = @transform_0, window_bounds = array<i64: 17>}, {transform_indices = @transform_1, window_bounds = array<i64: 2, 1, 64, 128>}, {transform_indices = @transform_2, window_bounds = array<i64: 1, 1, 64, 128>}]} {
    %c0 = arith.constant 0 : index
    %0 = memref.load %arg1[%c0] : memref<17xf32, #tpu.memory_space<smem>>
    %c1 = arith.constant 1 : index
    %1 = memref.load %arg1[%c1] : memref<17xf32, #tpu.memory_space<smem>>
    %c2 = arith.constant 2 : index
    %2 = memref.load %arg1[%c2] : memref<17xf32, #tpu.memory_space<smem>>
    %c3 = arith.constant 3 : index
    %3 = memref.load %arg1[%c3] : memref<17xf32, #tpu.memory_space<smem>>
    %c4 = arith.constant 4 : index
    %4 = memref.load %arg1[%c4] : memref<17xf32, #tpu.memory_space<smem>>
    %c5 = arith.constant 5 : index
    %5 = memref.load %arg1[%c5] : memref<17xf32, #tpu.memory_space<smem>>
    %c6 = arith.constant 6 : index
    %6 = memref.load %arg1[%c6] : memref<17xf32, #tpu.memory_space<smem>>
    %c7 = arith.constant 7 : index
    %7 = memref.load %arg1[%c7] : memref<17xf32, #tpu.memory_space<smem>>
    %c8 = arith.constant 8 : index
    %8 = memref.load %arg1[%c8] : memref<17xf32, #tpu.memory_space<smem>>
    %c9 = arith.constant 9 : index
    %9 = memref.load %arg1[%c9] : memref<17xf32, #tpu.memory_space<smem>>
    %c10 = arith.constant 10 : index
    %10 = memref.load %arg1[%c10] : memref<17xf32, #tpu.memory_space<smem>>
    %c11 = arith.constant 11 : index
    %11 = memref.load %arg1[%c11] : memref<17xf32, #tpu.memory_space<smem>>
    %c12 = arith.constant 12 : index
    %12 = memref.load %arg1[%c12] : memref<17xf32, #tpu.memory_space<smem>>
    %c13 = arith.constant 13 : index
    %13 = memref.load %arg1[%c13] : memref<17xf32, #tpu.memory_space<smem>>
    %c14 = arith.constant 14 : index
    %14 = memref.load %arg1[%c14] : memref<17xf32, #tpu.memory_space<smem>>
    %c15 = arith.constant 15 : index
    %15 = memref.load %arg1[%c15] : memref<17xf32, #tpu.memory_space<smem>>
    %c16 = arith.constant 16 : index
    %16 = memref.load %arg1[%c16] : memref<17xf32, #tpu.memory_space<smem>>
    %c0_i32 = arith.constant 0 : i32
    %c1_i32 = arith.constant 1 : i32
    %17 = arith.muli %c0_i32, %c1_i32 : i32
    %c0_i32_0 = arith.constant 0 : i32
    %18 = arith.addi %c0_i32_0, %17 : i32
    %c0_1 = arith.constant 0 : index
    %19 = arith.index_cast %18 : i32 to index
    %c0_2 = arith.constant 0 : index
    %c0_3 = arith.constant 0 : index
    %20 = vector.load %arg2[%c0_1, %19, %c0_2, %c0_3] : memref<2x1x64x128xf32, #tpu.memory_space<vmem>>, vector<1x1x64x128xf32>
    %21 = vector.shape_cast %20 : vector<1x1x64x128xf32> to vector<64x128xf32>
    %c1_4 = arith.constant 1 : index
    %22 = arith.index_cast %18 : i32 to index
    %c0_5 = arith.constant 0 : index
    %c0_6 = arith.constant 0 : index
    %23 = vector.load %arg2[%c1_4, %22, %c0_5, %c0_6] : memref<2x1x64x128xf32, #tpu.memory_space<vmem>>, vector<1x1x64x128xf32>
    %24 = vector.shape_cast %23 : vector<1x1x64x128xf32> to vector<64x128xf32>
    %25 = vector.broadcast %0 : f32 to vector<64x128xf32>
    %26 = arith.mulf %21, %25 : vector<64x128xf32>
    %27 = vector.broadcast %4 : f32 to vector<64x128xf32>
    %28 = arith.mulf %24, %27 : vector<64x128xf32>
    %29 = arith.addf %26, %28 : vector<64x128xf32>
    %30 = vector.broadcast %8 : f32 to vector<64x128xf32>
    %31 = arith.addf %29, %30 : vector<64x128xf32>
    %cst = arith.constant 0.000000e+00 : f32
    %32 = vector.broadcast %cst : f32 to vector<64x128xf32>
    %33 = arith.maximumf %31, %32 : vector<64x128xf32>
    %34 = vector.broadcast %12 : f32 to vector<64x128xf32>
    %35 = arith.mulf %33, %34 : vector<64x128xf32>
    %36 = vector.broadcast %1 : f32 to vector<64x128xf32>
    %37 = arith.mulf %21, %36 : vector<64x128xf32>
    %38 = vector.broadcast %5 : f32 to vector<64x128xf32>
    %39 = arith.mulf %24, %38 : vector<64x128xf32>
    %40 = arith.addf %37, %39 : vector<64x128xf32>
    %41 = vector.broadcast %9 : f32 to vector<64x128xf32>
    %42 = arith.addf %40, %41 : vector<64x128xf32>
    %cst_7 = arith.constant 0.000000e+00 : f32
    %43 = vector.broadcast %cst_7 : f32 to vector<64x128xf32>
    %44 = arith.maximumf %42, %43 : vector<64x128xf32>
    %45 = vector.broadcast %13 : f32 to vector<64x128xf32>
    %46 = arith.mulf %44, %45 : vector<64x128xf32>
    %47 = arith.addf %35, %46 : vector<64x128xf32>
    %48 = vector.broadcast %2 : f32 to vector<64x128xf32>
    %49 = arith.mulf %21, %48 : vector<64x128xf32>
    %50 = vector.broadcast %6 : f32 to vector<64x128xf32>
    %51 = arith.mulf %24, %50 : vector<64x128xf32>
    %52 = arith.addf %49, %51 : vector<64x128xf32>
    %53 = vector.broadcast %10 : f32 to vector<64x128xf32>
    %54 = arith.addf %52, %53 : vector<64x128xf32>
    %cst_8 = arith.constant 0.000000e+00 : f32
    %55 = vector.broadcast %cst_8 : f32 to vector<64x128xf32>
    %56 = arith.maximumf %54, %55 : vector<64x128xf32>
    %57 = vector.broadcast %14 : f32 to vector<64x128xf32>
    %58 = arith.mulf %56, %57 : vector<64x128xf32>
    %59 = arith.addf %47, %58 : vector<64x128xf32>
    %60 = vector.broadcast %3 : f32 to vector<64x128xf32>
    %61 = arith.mulf %21, %60 : vector<64x128xf32>
    %62 = vector.broadcast %7 : f32 to vector<64x128xf32>
    %63 = arith.mulf %24, %62 : vector<64x128xf32>
    %64 = arith.addf %61, %63 : vector<64x128xf32>
    %65 = vector.broadcast %11 : f32 to vector<64x128xf32>
    %66 = arith.addf %64, %65 : vector<64x128xf32>
    %cst_9 = arith.constant 0.000000e+00 : f32
    %67 = vector.broadcast %cst_9 : f32 to vector<64x128xf32>
    %68 = arith.maximumf %66, %67 : vector<64x128xf32>
    %69 = vector.broadcast %15 : f32 to vector<64x128xf32>
    %70 = arith.mulf %68, %69 : vector<64x128xf32>
    %71 = arith.addf %59, %70 : vector<64x128xf32>
    %72 = vector.broadcast %16 : f32 to vector<64x128xf32>
    %73 = arith.addf %71, %72 : vector<64x128xf32>
    %c0_10 = arith.constant 0 : index
    %74 = arith.index_cast %18 : i32 to index
    %c0_11 = arith.constant 0 : index
    %c0_12 = arith.constant 0 : index
    %75 = vector.load %arg3[%c0_10, %74, %c0_11, %c0_12] : memref<1x1x64x128xf32, #tpu.memory_space<vmem>>, vector<1x1x64x128xf32>
    %76 = vector.shape_cast %75 : vector<1x1x64x128xf32> to vector<64x128xf32>
    %77 = vector.shape_cast %73 : vector<64x128xf32> to vector<1x1x64x128xf32>
    tpu.vector_store %arg3[%c0_10, %74, %c0_11, %c0_12], %77 {strides = array<i32>} : memref<1x1x64x128xf32, #tpu.memory_space<vmem>>, vector<1x1x64x128xf32>,
    %c1_i32_13 = arith.constant 1 : i32
    return
  }
  func.func @transform_0(%arg0: i32) -> i32 {
    %c0_i32 = arith.constant 0 : i32
    %c0_i32_0 = arith.constant 0 : i32
    return %c0_i32 : i32
  }
  func.func @transform_1(%arg0: i32) -> (i32, i32, i32, i32) {
    %c0_i32 = arith.constant 0 : i32
    %c0_i32_0 = arith.constant 0 : i32
    %c0_i32_1 = arith.constant 0 : i32
    %c0_i32_2 = arith.constant 0 : i32
    return %c0_i32, %arg0, %c0_i32_0, %c0_i32_1 : i32, i32, i32, i32
  }
  func.func @transform_2(%arg0: i32) -> (i32, i32, i32, i32) {
    %c0_i32 = arith.constant 0 : i32
    %c0_i32_0 = arith.constant 0 : i32
    %c0_i32_1 = arith.constant 0 : i32
    %c0_i32_2 = arith.constant 0 : i32
    return %c0_i32, %arg0, %c0_i32_0, %c0_i32_1 : i32, i32, i32, i32
  }
}

</mosaic_0001>

<bundles_post_ra>
// kernel: discrim_forward.1
= control target key start
LH: loop header
LB: loop body
LE: loop exit
PB: predicated region body
PF: predicated region fallthrough
CT: control target
= control target key end

     0   :  { %7 = vsyncpa [#allocation3], 0  ;;  %s654_s0 = inlined_call_operand.vmem [shape: f32[17], index: 0, kind: input, shape index: {}]   ;;  %s655_s1 = inlined_call_operand.vmem [shape: f32[2,1,64,128], index: 1, kind: input, shape index: {}]   ;;  %s656_s2 = inlined_call_operand.vmem [shape: f32[1,1,64,128], index: 2, kind: output, shape index: {}]  }
   0x1   :  { %s14_s11 = sshll.u32 %s654_s0, 4  ;;  %s15_s11 = int_to_ptr.vmem [resolvable:$true] %s14_s11 }
   0x2   :  { %s337_s12 = scalar_lea.vmem %s15_s11, 16  ;;  %p342_p1 = scmp.lt.s32.totalorder %s15_s11, %s15_s11 }
   0x3   :  { %p338_p0 = scmp.ne.s32.totalorder %s15_s11, %s337_s12  ;;  %p343_p2 = scmp.lt.s32.totalorder %s337_s12, %s337_s12 }
   0x5   :  { %p344_p3 = por %p343_p2, %p342_p1 }
   0x7   :  { %p345_p4 = pnand %p344_p3, %p338_p0 }
   0x9   :  { %348 = shalt.err (!%p345_p4)
}
   0xa   :  { %s351_s13 = smov [#allocation2]  }
   0xb   :  { %17 = dma.vmem_to_smem %s15_s11, 16, %s351_s13, [#allocation3]  }
   0xc   :  { %349 = dma.done.wait [#allocation3], 16  }
   0xd   :  { %350 = vsyncadd [#allocation3], 4294967280 }
   0xe   :  { %23 = sfence }
   0xf   :  { %s24_s14 = sld [smem:[#allocation2]]  ;;  %v41_v0 = vld [vmem:[%s655_s1] sm:$0xff]  ;;  %v42_v1 = vld [vmem:[%s655_s1 + $0x8] sm:$0xff]  ;;  %v43_v2 = vld [vmem:[%s655_s1 + $0x10] sm:$0xff] }
  0x10   :  { %s312_s15 = sld [smem:[#allocation2 + $0x1]]  ;;  %v328_v8 = vld [vmem:[%s655_s1 + $0x40] sm:$0xff]  ;;  %v403_v11 = vld [vmem:[%s655_s1 + $0x48] sm:$0xff]  ;;  %v409_v13 = vld [vmem:[%s655_s1 + $0x50] sm:$0xff] }
  0x11   :  { %s313_s16 = sld [smem:[#allocation2 + $0x2]] }
  0x12   :  { %s314_s17 = sld [smem:[#allocation2 + $0x3]] }
  0x13   :  { %s315_s18 = sld [smem:[#allocation2 + $0x4]] }
  0x14   :  { %s316_s24 = sld [smem:[#allocation2 + $0x5]] }
  0x15   :  { %s379_s25 = sld [smem:[#allocation2 + $0x6]]  ;;  %v381_v3 = vstv %s24_s14 }
  0x16   :  { %s383_s26 = sld [smem:[#allocation2 + $0x7]]  ;;  %v59_v4 = vmul.f32 %v381_v3, %v41_v0  ;;  %v386_v5 = vstv %s312_s15  ;;  %v60_v6 = vmul.f32 %v381_v3, %v42_v1  ;;  %v390_v7 = vmul.f32 %v381_v3, %v43_v2 }
  0x17   :  { %s392_s27 = sld [smem:[#allocation2 + $0x8]]  ;;  %v111_v9 = vmul.f32 %v386_v5, %v41_v0  ;;  %v398_v10 = vstv %s313_s16  ;;  %v112_v12 = vmul.f32 %v386_v5, %v42_v1  ;;  %v412_v14 = vmul.f32 %v386_v5, %v43_v2 }
  0x18   :  { %s414_s6 = sld [smem:[#allocation2 + $0x9]]  ;;  %v171_v15 = vmul.f32 %v398_v10, %v41_v0  ;;  %v417_v16 = vstv %s314_s17  ;;  %v172_v17 = vmul.f32 %v398_v10, %v42_v1  ;;  %v421_v18 = vmul.f32 %v398_v10, %v43_v2 }
  0x19   :  { %s423_s7 = sld [smem:[#allocation2 + $0xa]]  ;;  %v425_v19 = vstv %s315_s18  ;;  %v231_v20 = vmul.f32 %v417_v16, %v41_v0  ;;  %v232_v21 = vmul.f32 %v417_v16, %v42_v1  ;;  %v430_v22 = vmul.f32 %v417_v16, %v43_v2 }
  0x1a   :  { %s432_s8 = sld [smem:[#allocation2 + $0xb]]  ;;  %v68_v23 = vmul.f32 %v328_v8, %v425_v19  ;;  %v435_v24 = vstv %s316_s24  ;;  %v69_v25 = vmul.f32 %v403_v11, %v425_v19  ;;  %v70_v26 = vmul.f32 %v409_v13, %v425_v19 }
  0x1b   :  { %s323_s9 = sld [smem:[#allocation2 + $0xc]]  ;;  %v120_v27 = vmul.f32 %v328_v8, %v435_v24  ;;  %v443_v28 = vstv %s379_s25  ;;  %v121_v29 = vmul.f32 %v403_v11, %v435_v24  ;;  %v122_v30 = vmul.f32 %v409_v13, %v435_v24 }
  0x1c   :  { %s324_s10 = sld [smem:[#allocation2 + $0xd]]  ;;  %v76_v31 = vadd.f32 %v68_v23, %v59_v4  ;;  %v180_v32 = vmul.f32 %v328_v8, %v443_v28  ;;  %v451_v33 = vstv %s383_s26  ;;  %v77_v34 = vadd.f32 %v69_v25, %v60_v6  ;;  %v44_v4 = vld [vmem:[%s655_s1 + $0x18] sm:$0xff] }
  0x1d   :  { %s325_s11 = sld [smem:[#allocation2 + $0xe]]  ;;  %v454_v35 = vstv %s392_s27  ;;  %v128_v36 = vadd.f32 %v120_v27, %v111_v9  ;;  %v240_v37 = vmul.f32 %v328_v8, %v451_v33  ;;  %v129_v38 = vadd.f32 %v121_v29, %v112_v12 }
  0x1e   :  { %s326_s12 = sld [smem:[#allocation2 + $0xf]]  ;;  %v85_v39 = vadd.f32 %v454_v35, %v76_v31  ;;  %v459_v40 = vstv %s414_s6  ;;  %v188_v41 = vadd.f32 %v180_v32, %v171_v15  ;;  %v86_v42 = vadd.f32 %v454_v35, %v77_v34 }
  0x1f   :  { %s327_s13 = sld [smem:[#allocation2 + $0x10]]  ;;  %v137_v43 = vadd.f32 %v459_v40, %v128_v36  ;;  %v464_v44 = vstv %s423_s7  ;;  %v248_v45 = vadd.f32 %v240_v37, %v231_v20  ;;  %v138_v46 = vadd.f32 %v459_v40, %v129_v38 }
  0x20   :  { %v93_v47 = vmax.f32 %v85_v39, 0.0  ;;  %v197_v48 = vadd.f32 %v464_v44, %v188_v41  ;;  %v469_v49 = vstv %s432_s8  ;;  %v94_v50 = vmax.f32 %v86_v42, 0.0 }
  0x21   :  { %v471_v51 = vstv %s323_s9  ;;  %v145_v52 = vmax.f32 %v137_v43, 0.0  ;;  %v257_v53 = vadd.f32 %v469_v49, %v248_v45  ;;  %v146_v54 = vmax.f32 %v138_v46, 0.0 }
  0x22   :  { %v102_v55 = vmul.f32 %v471_v51, %v93_v47  ;;  %v475_v56 = vstv %s324_s10  ;;  %v205_v57 = vmax.f32 %v197_v48, 0.0  ;;  %v103_v58 = vmul.f32 %v471_v51, %v94_v50 }
  0x23   :  { %v154_v59 = vmul.f32 %v475_v56, %v145_v52  ;;  %v479_v60 = vstv %s325_s11  ;;  %v265_v61 = vmax.f32 %v257_v53, 0.0  ;;  %v155_v62 = vmul.f32 %v475_v56, %v146_v54 }
  0x24   :  { %v214_v63 = vmul.f32 %v479_v60, %v205_v57  ;;  %v483_v0 = vstv %s326_s12  ;;  %v181_v1 = vmul.f32 %v403_v11, %v443_v28  ;;  %v241_v2 = vmul.f32 %v403_v11, %v451_v33  ;;  %v331_v11 = vld [vmem:[%s655_s1 + $0x58] sm:$0xff] }
  0x25   :  { %v162_v6 = vadd.f32 %v154_v59, %v102_v55  ;;  %v274_v8 = vmul.f32 %v483_v0, %v265_v61  ;;  %v493_v9 = vstv %s327_s13  ;;  %v163_v12 = vadd.f32 %v155_v62, %v103_v58  ;;  %v45_v59 = vld [vmem:[%s655_s1 + $0x20] sm:$0xff] }
  0x26   :  { %v189_v15 = vadd.f32 %v181_v1, %v172_v17  ;;  %v249_v20 = vadd.f32 %v241_v2, %v232_v21  ;;  %v78_v23 = vadd.f32 %v70_v26, %v390_v7  ;;  %v130_v25 = vadd.f32 %v122_v30, %v412_v14  ;;  %v332_v2 = vld [vmem:[%s655_s1 + $0x60] sm:$0xff] }
  0x27   :  { %v222_v27 = vadd.f32 %v214_v63, %v162_v6  ;;  %v182_v29 = vmul.f32 %v409_v13, %v443_v28  ;;  %v242_v31 = vmul.f32 %v409_v13, %v451_v33  ;;  %v62_v32 = vmul.f32 %v381_v3, %v44_v4 }
  0x28   :  { %v198_v17 = vadd.f32 %v464_v44, %v189_v15  ;;  %v258_v21 = vadd.f32 %v469_v49, %v249_v20  ;;  %v87_v7 = vadd.f32 %v454_v35, %v78_v23  ;;  %v139_v14 = vadd.f32 %v459_v40, %v130_v25 }
  0x29   :  { %v282_v26 = vadd.f32 %v274_v8, %v222_v27  ;;  %v190_v30 = vadd.f32 %v182_v29, %v421_v18  ;;  %v250_v34 = vadd.f32 %v242_v31, %v430_v22  ;;  %v71_v36 = vmul.f32 %v331_v11, %v425_v19 }
  0x2a   :  { %v206_v37 = vmax.f32 %v198_v17, 0.0  ;;  %v266_v38 = vmax.f32 %v258_v21, 0.0  ;;  %v95_v13 = vmax.f32 %v87_v7, 0.0  ;;  %v147_v39 = vmax.f32 %v139_v14, 0.0 }
  0x2b   :  { %v291_v41 = vadd.f32 %v493_v9, %v282_v26  ;;  %v199_v42 = vadd.f32 %v464_v44, %v190_v30  ;;  %v259_v43 = vadd.f32 %v469_v49, %v250_v34  ;;  %v79_v45 = vadd.f32 %v71_v36, %v62_v32 }
  0x2c   :  { %v215_v46 = vmul.f32 %v479_v60, %v206_v37  ;;  %v275_v47 = vmul.f32 %v483_v0, %v266_v38  ;;  %v104_v18 = vmul.f32 %v471_v51, %v95_v13  ;;  %v156_v22 = vmul.f32 %v475_v56, %v147_v39  ;;  %v46_v39 = vld [vmem:[%s655_s1 + $0x28] sm:$0xff] }
  0x2d   :  { %299 = vst [vmem:[%s656_s2] sm:$0xff] %v291_v41  ;;  %v207_v48 = vmax.f32 %v199_v42, 0.0  ;;  %v267_v50 = vmax.f32 %v259_v43, 0.0  ;;  %v88_v52 = vadd.f32 %v454_v35, %v79_v45  ;;  %v114_v53 = vmul.f32 %v386_v5, %v44_v4 }
  0x2e   :  { %v223_v54 = vadd.f32 %v215_v46, %v163_v12  ;;  %v164_v55 = vadd.f32 %v156_v22, %v104_v18  ;;  %v123_v57 = vmul.f32 %v331_v11, %v435_v24  ;;  %v174_v58 = vmul.f32 %v398_v10, %v44_v4  ;;  %v333_v46 = vld [vmem:[%s655_s1 + $0x68] sm:$0xff] }
  0x2f   :  { %v216_v61 = vmul.f32 %v479_v60, %v207_v48  ;;  %v276_v62 = vmul.f32 %v483_v0, %v267_v50  ;;  %v96_v63 = vmax.f32 %v88_v52, 0.0  ;;  %v183_v1 = vmul.f32 %v331_v11, %v443_v28 }
  0x30   :  { %v283_v6 = vadd.f32 %v275_v47, %v223_v54  ;;  %v131_v8 = vadd.f32 %v123_v57, %v114_v53  ;;  %v234_v12 = vmul.f32 %v417_v16, %v44_v4  ;;  %v243_v15 = vmul.f32 %v331_v11, %v451_v33 }
  0x31   :  { %v224_v20 = vadd.f32 %v216_v61, %v164_v55  ;;  %v105_v23 = vmul.f32 %v471_v51, %v96_v63  ;;  %v191_v25 = vadd.f32 %v183_v1, %v174_v58  ;;  %v63_v27 = vmul.f32 %v381_v3, %v45_v59 }
  0x32   :  { %v292_v29 = vadd.f32 %v493_v9, %v283_v6  ;;  %v140_v31 = vadd.f32 %v459_v40, %v131_v8  ;;  %v251_v32 = vadd.f32 %v243_v15, %v234_v12  ;;  %v72_v17 = vmul.f32 %v332_v2, %v425_v19 }
  0x33   :  { %v284_v21 = vadd.f32 %v276_v62, %v224_v20  ;;  %v200_v7 = vadd.f32 %v464_v44, %v191_v25  ;;  %v115_v4 = vmul.f32 %v386_v5, %v45_v59  ;;  %v124_v11 = vmul.f32 %v332_v2, %v435_v24 }
  0x34   :  { %300 = vst [vmem:[%s656_s2 + $0x8] sm:$0xff] %v292_v29  ;;  %v148_v14 = vmax.f32 %v140_v31, 0.0  ;;  %v260_v26 = vadd.f32 %v469_v49, %v251_v32  ;;  %v80_v30 = vadd.f32 %v72_v17, %v63_v27  ;;  %v175_v34 = vmul.f32 %v398_v10, %v45_v59  ;;  %v47_v17 = vld [vmem:[%s655_s1 + $0x30] sm:$0xff] }
  0x35   :  { %v293_v36 = vadd.f32 %v493_v9, %v284_v21  ;;  %v208_v37 = vmax.f32 %v200_v7, 0.0  ;;  %v132_v38 = vadd.f32 %v124_v11, %v115_v4  ;;  %v184_v13 = vmul.f32 %v332_v2, %v443_v28  ;;  %v334_v21 = vld [vmem:[%s655_s1 + $0x70] sm:$0xff] }
  0x36   :  { %v157_v41 = vmul.f32 %v475_v56, %v148_v14  ;;  %v268_v42 = vmax.f32 %v260_v26, 0.0  ;;  %v89_v43 = vadd.f32 %v454_v35, %v80_v30  ;;  %v235_v45 = vmul.f32 %v417_v16, %v45_v59 }
  0x37   :  { %301 = vst [vmem:[%s656_s2 + $0x10] sm:$0xff] %v293_v36  ;;  %v217_v47 = vmul.f32 %v479_v60, %v208_v37  ;;  %v141_v18 = vadd.f32 %v459_v40, %v132_v38  ;;  %v192_v22 = vadd.f32 %v184_v13, %v175_v34  ;;  %v244_v48 = vmul.f32 %v332_v2, %v451_v33 }
  0x38   :  { %v165_v50 = vadd.f32 %v157_v41, %v105_v23  ;;  %v277_v52 = vmul.f32 %v483_v0, %v268_v42  ;;  %v97_v53 = vmax.f32 %v89_v43, 0.0  ;;  %v64_v54 = vmul.f32 %v381_v3, %v46_v39 }
  0x39   :  { %v149_v55 = vmax.f32 %v141_v18, 0.0  ;;  %v201_v57 = vadd.f32 %v464_v44, %v192_v22  ;;  %v252_v58 = vadd.f32 %v244_v48, %v235_v45  ;;  %v73_v59 = vmul.f32 %v333_v46, %v425_v19 }
  0x3a   :  { %v225_v61 = vadd.f32 %v217_v47, %v165_v50  ;;  %v106_v62 = vmul.f32 %v471_v51, %v97_v53  ;;  %v116_v63 = vmul.f32 %v386_v5, %v46_v39  ;;  %v125_v1 = vmul.f32 %v333_v46, %v435_v24 }
  0x3b   :  { %v158_v2 = vmul.f32 %v475_v56, %v149_v55  ;;  %v209_v6 = vmax.f32 %v201_v57, 0.0  ;;  %v261_v8 = vadd.f32 %v469_v49, %v252_v58  ;;  %v81_v12 = vadd.f32 %v73_v59, %v64_v54  ;;  %v48_v54 = vld [vmem:[%s655_s1 + $0x38] sm:$0xff] }
  0x3c   :  { %v285_v15 = vadd.f32 %v277_v52, %v225_v61  ;;  %v133_v20 = vadd.f32 %v125_v1, %v116_v63  ;;  %v176_v23 = vmul.f32 %v398_v10, %v46_v39  ;;  %v185_v25 = vmul.f32 %v333_v46, %v443_v28  ;;  %v335_v61 = vld [vmem:[%s655_s1 + $0x78] sm:$0xff] }
  0x3d   :  { %v166_v27 = vadd.f32 %v158_v2, %v106_v62  ;;  %v218_v29 = vmul.f32 %v479_v60, %v209_v6  ;;  %v269_v31 = vmax.f32 %v261_v8, 0.0  ;;  %v90_v32 = vadd.f32 %v454_v35, %v81_v12 }
  0x3e   :  { %v294_v7 = vadd.f32 %v493_v9, %v285_v15  ;;  %v142_v4 = vadd.f32 %v459_v40, %v133_v20  ;;  %v193_v11 = vadd.f32 %v185_v25, %v176_v23  ;;  %v236_v14 = vmul.f32 %v417_v16, %v46_v39 }
  0x3f   :  { %v226_v26 = vadd.f32 %v218_v29, %v166_v27  ;;  %v278_v30 = vmul.f32 %v483_v0, %v269_v31  ;;  %v98_v34 = vmax.f32 %v90_v32, 0.0  ;;  %v245_v36 = vmul.f32 %v333_v46, %v451_v33 }
  0x40   :  { %302 = vst [vmem:[%s656_s2 + $0x18] sm:$0xff] %v294_v7  ;;  %v150_v37 = vmax.f32 %v142_v4, 0.0  ;;  %v202_v38 = vadd.f32 %v464_v44, %v193_v11  ;;  %v65_v13 = vmul.f32 %v381_v3, %v47_v17  ;;  %v74_v41 = vmul.f32 %v334_v21, %v425_v19 }
  0x41   :  { %v286_v42 = vadd.f32 %v278_v30, %v226_v26  ;;  %v107_v39 = vmul.f32 %v471_v51, %v98_v34  ;;  %v253_v43 = vadd.f32 %v245_v36, %v236_v14  ;;  %v117_v45 = vmul.f32 %v386_v5, %v47_v17 }
  0x42   :  { %v159_v47 = vmul.f32 %v475_v56, %v150_v37  ;;  %v210_v46 = vmax.f32 %v202_v38, 0.0  ;;  %v82_v18 = vadd.f32 %v74_v41, %v65_v13  ;;  %v126_v22 = vmul.f32 %v334_v21, %v435_v24 }
  0x43   :  { %v295_v48 = vadd.f32 %v493_v9, %v286_v42  ;;  %v262_v50 = vadd.f32 %v469_v49, %v253_v43  ;;  %v177_v52 = vmul.f32 %v398_v10, %v47_v17  ;;  %v186_v53 = vmul.f32 %v334_v21, %v443_v28 }
  0x44   :  { %v167_v55 = vadd.f32 %v159_v47, %v107_v39  ;;  %v219_v57 = vmul.f32 %v479_v60, %v210_v46  ;;  %v91_v58 = vadd.f32 %v454_v35, %v82_v18  ;;  %v134_v59 = vadd.f32 %v126_v22, %v117_v45 }
  0x45   :  { %303 = vst [vmem:[%s656_s2 + $0x20] sm:$0xff] %v295_v48  ;;  %v270_v62 = vmax.f32 %v262_v50, 0.0  ;;  %v194_v63 = vadd.f32 %v186_v53, %v177_v52  ;;  %v237_v1 = vmul.f32 %v417_v16, %v47_v17  ;;  %v246_v2 = vmul.f32 %v334_v21, %v451_v33 }
  0x46   :  { %v227_v6 = vadd.f32 %v219_v57, %v167_v55  ;;  %v99_v8 = vmax.f32 %v91_v58, 0.0  ;;  %v143_v12 = vadd.f32 %v459_v40, %v134_v59  ;;  %v66_v15 = vmul.f32 %v381_v3, %v48_v54 }
  0x47   :  { %v279_v20 = vmul.f32 %v483_v0, %v270_v62  ;;  %v203_v23 = vadd.f32 %v464_v44, %v194_v63  ;;  %v254_v25 = vadd.f32 %v246_v2, %v237_v1  ;;  %v75_v27 = vmul.f32 %v335_v61, %v425_v19 }
  0x48   :  { %v108_v29 = vmul.f32 %v471_v51, %v99_v8  ;;  %v151_v31 = vmax.f32 %v143_v12, 0.0  ;;  %v118_v32 = vmul.f32 %v386_v5, %v48_v54  ;;  %v127_v17 = vmul.f32 %v335_v61, %v435_v24 }
  0x49   :  { %v287_v21 = vadd.f32 %v279_v20, %v227_v6  ;;  %v211_v7 = vmax.f32 %v203_v23, 0.0  ;;  %v263_v4 = vadd.f32 %v469_v49, %v254_v25  ;;  %v83_v11 = vadd.f32 %v75_v27, %v66_v15 }
  0x4a   :  { %v160_v3 = vmul.f32 %v475_v56, %v151_v31  ;;  %v135_v14 = vadd.f32 %v127_v17, %v118_v32  ;;  %v178_v26 = vmul.f32 %v398_v10, %v48_v54  ;;  %v187_v30 = vmul.f32 %v335_v61, %v443_v28 }
  0x4b   :  { %v296_v19 = vadd.f32 %v493_v9, %v287_v21  ;;  %v220_v34 = vmul.f32 %v479_v60, %v211_v7  ;;  %v271_v36 = vmax.f32 %v263_v4, 0.0  ;;  %v92_v5 = vadd.f32 %v454_v35, %v83_v11 }
  0x4c   :  { %v168_v24 = vadd.f32 %v160_v3, %v108_v29  ;;  %v144_v37 = vadd.f32 %v459_v40, %v135_v14  ;;  %v195_v38 = vadd.f32 %v187_v30, %v178_v26  ;;  %v238_v13 = vmul.f32 %v417_v16, %v48_v54 }
  0x4d   :  { %304 = vst [vmem:[%s656_s2 + $0x28] sm:$0xff] %v296_v19  ;;  %v280_v10 = vmul.f32 %v483_v0, %v271_v36  ;;  %v100_v28 = vmax.f32 %v92_v5, 0.0  ;;  %v247_v41 = vmul.f32 %v335_v61, %v451_v33 }
  0x4e   :  { %v228_v42 = vadd.f32 %v220_v34, %v168_v24  ;;  %v152_v39 = vmax.f32 %v144_v37, 0.0  ;;  %v204_v43 = vadd.f32 %v464_v44, %v195_v38 }
  0x4f   :  { %v109_v35 = vmul.f32 %v471_v51, %v100_v28  ;;  %v255_v45 = vadd.f32 %v247_v41, %v238_v13 }
  0x50   :  { %v288_v40 = vadd.f32 %v280_v10, %v228_v42  ;;  %v161_v47 = vmul.f32 %v475_v56, %v152_v39  ;;  %v212_v16 = vmax.f32 %v204_v43, 0.0 }
  0x51   :  { %v264_v46 = vadd.f32 %v469_v49, %v255_v45 }
  0x52   :  { %v297_v18 = vadd.f32 %v493_v9, %v288_v40  ;;  %v169_v22 = vadd.f32 %v161_v47, %v109_v35  ;;  %v221_v48 = vmul.f32 %v479_v60, %v212_v16 }
  0x53   :  { %v272_v50 = vmax.f32 %v264_v46, 0.0 }
  0x54   :  { %305 = vst [vmem:[%s656_s2 + $0x30] sm:$0xff] %v297_v18  ;;  %v229_v33 = vadd.f32 %v221_v48, %v169_v22 }
  0x55   :  { %v281_v44 = vmul.f32 %v483_v0, %v272_v50 }
  0x57   :  { %v289_v51 = vadd.f32 %v281_v44, %v229_v33 }
  0x59   :  { %v298_v52 = vadd.f32 %v493_v9, %v289_v51 }
  0x5b   :  { %306 = vst [vmem:[%s656_s2 + $0x38] sm:$0xff] %v298_v52 }
  0x5c   :  { %311 = vsyncpa [#allocation3], 1 }

</bundles_post_ra>
